<compile_context>
chip_gen: v6e
topology: v6e:2x2x1
jax: 0.10.0
libtpu: 0.0.40
codegen_flags: <defaults>
</compile_context>

<pallas_src>
import functools

import jax
import jax.numpy as jnp
import numpy as np
from jax.experimental import pallas as pl
from jax.experimental.pallas import tpu as pltpu


def _sliding_bias_kernel(bpg_ref, o_ref, *, H, W, TH1, G):
    """One grid step emits TH1 consecutive h1 rows of the output.

    bpg_ref : VMEM, (NM, W, G*W)  resident grouped band table (read once from HBM)
    o_ref   : VMEM, (TH1, W, H*W) lane-dense output rows for this h1 block

    For output row h1 and h2-group kb (covering h2 in [kb*G, kb*G + G)):
      o[h1, :, kb*G*W : kb*G*W + G*W] = bpg[kb*G + (H-1) - h1]
    i.e. the only dynamic index is on the leading (untiled) dim of bpg; all
    lane offsets are static, so the body is just aligned slice loads + stores.
    """
    HW = H * W
    LW = G * W
    n_groups = -(-H // G)                       # ceil(H / G), static
    h1_base = pl.program_id(0) * TH1

    def emit_row(t, h1):
        for kb in range(n_groups):              # static: lane offsets stay static
            m0 = kb * G + (H - 1) - h1          # dynamic leading-dim index only
            lo = kb * LW                        # static lane offset (mult. of 128 if W | 128)
            width = min(LW, HW - lo)            # static (last group may be partial)
            o_ref[t, :, lo:lo + width] = bpg_ref[m0, :, :width]

    if TH1 <= 8:
        for t in range(TH1):                    # static unroll (LLO visibility)
            emit_row(t, jnp.minimum(h1_base + t, H - 1))
    else:
        @pl.loop(0, TH1)
        def _(t):
            # Clamp so rows of a partial trailing block still read in-bounds;
            # their writeback is dropped by Pallas.
            emit_row(t, jnp.minimum(h1_base + t, H - 1))


def _band_table(biases, H, W, R, G, NM, out_dtype):
    """bpg[m, w1, j*W + w2] = biases[(m+j)-(H-1)+R, (w2-w1)+R], masked to 0 outside radius."""
    dh = (jnp.arange(NM)[:, None] + jnp.arange(G)[None, :]) - (H - 1)      # (NM, G)
    dw = jnp.arange(W)[None, :] - jnp.arange(W)[:, None]                   # (W[w1], W[w2])
    a = jnp.clip(dh + R, 0, 2 * R)
    b = jnp.clip(dw + R, 0, 2 * R)
    vals = biases[a[:, None, :, None], b[None, :, None, :]]                # (NM, W, G, W)
    valid = ((jnp.abs(dh) <= R)[:, None, :, None]
             & (jnp.abs(dw) <= R)[None, :, None, :])
    vals = jnp.where(valid, vals, 0).astype(out_dtype)
    return vals.reshape(NM, W, G * W)


def _padded_vmem_bytes(shape, dtype):
    """Rough VMEM footprint of one buffer of `shape` ((8,128)-tile padding)."""
    itemsize = jnp.dtype(dtype).itemsize
    sub = -(-shape[-2] // 8) * 8
    lane = -(-shape[-1] // 128) * 128
    lead = 1
    for d in shape[:-2]:
        lead *= d
    return lead * sub * lane * itemsize


def _xla_forward(biases, H, W, R, out_dtype):
    """Plain-XLA formulation (tiny-problem path and correctness reference)."""
    h1 = jnp.arange(H)[:, None, None, None]
    w1 = jnp.arange(W)[None, :, None, None]
    h2 = jnp.arange(H)[None, None, :, None]
    w2 = jnp.arange(W)[None, None, None, :]
    a = h2 - h1 + R
    b = w2 - w1 + R
    valid = (a >= 0) & (a <= 2 * R) & (b >= 0) & (b <= 2 * R)
    ac = jnp.clip(a, 0, 2 * R)
    bc = jnp.clip(b, 0, 2 * R)
    return jnp.where(valid, biases[ac, bc], 0).astype(out_dtype)


def sliding_pos_biases_2d(biases, H, W, R, *, out_dtype=None,
                          force_pallas=False, min_pallas_out_bytes=1 << 20):
    """Pallas equivalent of SlidingPosBiases2D.forward(feat_shape=(..., H, W))."""
    out_dtype = jnp.dtype(biases.dtype if out_dtype is None else out_dtype)
    HW = H * W
    out_bytes = H * W * HW * out_dtype.itemsize

    # Tiny problems: a pallas_call here is pure overhead (launch + a couple of
    # ~0.35 us grid steps); the plain-XLA form is faster.
    if not force_pallas and out_bytes < min_pallas_out_bytes:
        return _xla_forward(biases, H, W, R, out_dtype)

    # Number of h2 values packed into one 128-lane-aligned chunk of the output.
    G = 128 // W if (W < 128 and 128 % W == 0) else 1
    G = max(1, min(G, H))
    n_groups = -(-H // G)
    NM = (n_groups - 1) * G + H                 # leading dim of the band table

    bpg = _band_table(biases, H, W, R, G, NM, out_dtype)

    # ---- per-generation VMEM-aware tiling --------------------------------
    try:
        vmem_cap = int(pltpu.get_tpu_info().vmem_capacity_bytes)
    except Exception:
        vmem_cap = 64 * 1024 * 1024             # conservative default (v7x)
    budget = min(int(vmem_cap * 0.85), vmem_cap - (8 << 20))

    bpg_vmem = _padded_vmem_bytes((NM, W, G * W), out_dtype)
    row_vmem = _padded_vmem_bytes((1, W, HW), out_dtype)   # one h1 row of the output block
    avail = budget - 2 * bpg_vmem               # band table may be double-buffered
    if avail < 2 * row_vmem:
        # TODO(synk): windowed band-table Pallas path for very large H*W^2 where
        # the resident table no longer fits (notably v7x's 64 MiB VMEM).
        return _xla_forward(biases, H, W, R, out_dtype)

    TH1 = int(max(1, min(H, avail // (2 * row_vmem))))
    n_steps = -(-H // TH1)
    if H > 1:
        # Keep >= 2 steps and an even count so the "parallel" axis splits
        # evenly across v7x's two TensorCores (never increases TH1 past budget).
        if n_steps < 2:
            n_steps = 2
        elif n_steps % 2 == 1 and n_steps < H:
            n_steps += 1
        TH1 = -(-H // n_steps)
        n_steps = -(-H // TH1)

    out_block_vmem = TH1 * row_vmem
    vmem_limit = 2 * bpg_vmem + 2 * out_block_vmem + (4 << 20)
    vmem_limit = int(min(vmem_cap, max(vmem_limit, 16 << 20)))

    kernel = functools.partial(_sliding_bias_kernel, H=H, W=W, TH1=TH1, G=G)
    out3 = pl.pallas_call(
        kernel,
        out_shape=jax.ShapeDtypeStruct((H, W, HW), out_dtype),
        grid=(n_steps,),
        in_specs=[pl.BlockSpec((NM, W, G * W), lambda i: (0, 0, 0))],  # resident, DMA'd once
        out_specs=pl.BlockSpec((TH1, W, HW), lambda i: (i, 0, 0)),
        compiler_params=pltpu.CompilerParams(
            dimension_semantics=("parallel",),
            vmem_limit_bytes=vmem_limit,
        ),
    )(bpg)

    # Row-major-compatible (free) reshape back to the PyTorch output layout.
    return out3.reshape(H, W, H, W)


if __name__ == "__main__":
    # Module defaults: pos_dim=2, pos_bias_radius R=7.
    # feat_shape analogous to a (B, C, H, W) feature map; only (H, W) matter.
    R = 7
    feat_shape = (2, 4, 16, 16)
    H, W = feat_shape[-2:]

    # Module __init__ creates biases of shape (2R+1, 2R+1) (zeros in PyTorch);
    # use deterministic random values so the check is non-trivial.
    key = jax.random.PRNGKey(0)
    biases = jax.random.normal(key, (2 * R + 1, 2 * R + 1), dtype=jnp.float32)

    # Force the Pallas path (the auto dispatch would route this 256 KiB output
    # to plain XLA) so the kernel itself is exercised and verified.
    out = jax.block_until_ready(sliding_pos_biases_2d(biases, H, W, R, force_pallas=True))

    ref = jax.block_until_ready(_xla_forward(biases, H, W, R, jnp.float32))
    np.testing.assert_allclose(np.asarray(out), np.asarray(ref), atol=1e-6, rtol=1e-6)

    # The auto-dispatch (tiny-problem XLA) path must agree as well.
    out_auto = jax.block_until_ready(sliding_pos_biases_2d(biases, H, W, R))
    np.testing.assert_allclose(np.asarray(out_auto), np.asarray(ref), atol=1e-6, rtol=1e-6)

    print("KERNEL_OK")
</pallas_src>

<mosaic_0001>
module attributes {stable_mosaic.version = 11 : i64} {
  func.func @_sliding_bias_kernel(%arg0: i32, %arg1: memref<24x16x128xf32, #tpu.memory_space<vmem>>, %arg2: memref<8x16x256xf32, #tpu.memory_space<vmem>>) attributes {dimension_semantics = [#tpu.dimension_semantics<parallel>], iteration_bounds = array<i64: 2>, scalar_prefetch = 0 : i64, scratch_operands = 0 : i64, tpu.core_type = #tpu.core_type<tc>, window_params = [{pipeline_mode = #tpu.pipeline_mode<synchronous>, transform_indices = @transform_0, window_bounds = array<i64: 24, 16, 128>}, {transform_indices = @transform_1, window_bounds = array<i64: 8, 16, 256>}]} {
    %c8_i32 = arith.constant 8 : i32
    %0 = arith.muli %arg0, %c8_i32 : i32
    %c0_i32 = arith.constant 0 : i32
    %1 = arith.addi %0, %c0_i32 : i32
    %c15_i32 = arith.constant 15 : i32
    %2 = arith.minsi %1, %c15_i32 : i32
    %c15_i32_0 = arith.constant 15 : i32
    %3 = arith.subi %c15_i32_0, %2 : i32
    %4 = arith.index_cast %3 : i32 to index
    %c0 = arith.constant 0 : index
    %c0_1 = arith.constant 0 : index
    %5 = vector.load %arg1[%4, %c0, %c0_1] : memref<24x16x128xf32, #tpu.memory_space<vmem>>, vector<1x16x128xf32>
    %6 = vector.shape_cast %5 : vector<1x16x128xf32> to vector<16x128xf32>
    %c0_2 = arith.constant 0 : index
    %c0_3 = arith.constant 0 : index
    %c0_4 = arith.constant 0 : index
    %7 = vector.load %arg2[%c0_2, %c0_3, %c0_4] : memref<8x16x256xf32, #tpu.memory_space<vmem>>, vector<1x16x128xf32>
    %8 = vector.shape_cast %7 : vector<1x16x128xf32> to vector<16x128xf32>
    %9 = vector.shape_cast %6 : vector<16x128xf32> to vector<1x16x128xf32>
    tpu.vector_store %arg2[%c0_2, %c0_3, %c0_4], %9 {strides = array<i32>} : memref<8x16x256xf32, #tpu.memory_space<vmem>>, vector<1x16x128xf32>,
    %c23_i32 = arith.constant 23 : i32
    %10 = arith.subi %c23_i32, %2 : i32
    %11 = arith.index_cast %10 : i32 to index
    %c0_5 = arith.constant 0 : index
    %c0_6 = arith.constant 0 : index
    %12 = vector.load %arg1[%11, %c0_5, %c0_6] : memref<24x16x128xf32, #tpu.memory_space<vmem>>, vector<1x16x128xf32>
    %13 = vector.shape_cast %12 : vector<1x16x128xf32> to vector<16x128xf32>
    %c0_7 = arith.constant 0 : index
    %c0_8 = arith.constant 0 : index
    %c128 = arith.constant 128 : index
    %14 = vector.load %arg2[%c0_7, %c0_8, %c128] : memref<8x16x256xf32, #tpu.memory_space<vmem>>, vector<1x16x128xf32>
    %15 = vector.shape_cast %14 : vector<1x16x128xf32> to vector<16x128xf32>
    %16 = vector.shape_cast %13 : vector<16x128xf32> to vector<1x16x128xf32>
    tpu.vector_store %arg2[%c0_7, %c0_8, %c128], %16 {strides = array<i32>} : memref<8x16x256xf32, #tpu.memory_space<vmem>>, vector<1x16x128xf32>,
    %c1_i32 = arith.constant 1 : i32
    %17 = arith.addi %0, %c1_i32 : i32
    %c15_i32_9 = arith.constant 15 : i32
    %18 = arith.minsi %17, %c15_i32_9 : i32
    %c15_i32_10 = arith.constant 15 : i32
    %19 = arith.subi %c15_i32_10, %18 : i32
    %20 = arith.index_cast %19 : i32 to index
    %c0_11 = arith.constant 0 : index
    %c0_12 = arith.constant 0 : index
    %21 = vector.load %arg1[%20, %c0_11, %c0_12] : memref<24x16x128xf32, #tpu.memory_space<vmem>>, vector<1x16x128xf32>
    %22 = vector.shape_cast %21 : vector<1x16x128xf32> to vector<16x128xf32>
    %c1 = arith.constant 1 : index
    %c0_13 = arith.constant 0 : index
    %c0_14 = arith.constant 0 : index
    %23 = vector.load %arg2[%c1, %c0_13, %c0_14] : memref<8x16x256xf32, #tpu.memory_space<vmem>>, vector<1x16x128xf32>
    %24 = vector.shape_cast %23 : vector<1x16x128xf32> to vector<16x128xf32>
    %25 = vector.shape_cast %22 : vector<16x128xf32> to vector<1x16x128xf32>
    tpu.vector_store %arg2[%c1, %c0_13, %c0_14], %25 {strides = array<i32>} : memref<8x16x256xf32, #tpu.memory_space<vmem>>, vector<1x16x128xf32>,
    %c23_i32_15 = arith.constant 23 : i32
    %26 = arith.subi %c23_i32_15, %18 : i32
    %27 = arith.index_cast %26 : i32 to index
    %c0_16 = arith.constant 0 : index
    %c0_17 = arith.constant 0 : index
    %28 = vector.load %arg1[%27, %c0_16, %c0_17] : memref<24x16x128xf32, #tpu.memory_space<vmem>>, vector<1x16x128xf32>
    %29 = vector.shape_cast %28 : vector<1x16x128xf32> to vector<16x128xf32>
    %c1_18 = arith.constant 1 : index
    %c0_19 = arith.constant 0 : index
    %c128_20 = arith.constant 128 : index
    %30 = vector.load %arg2[%c1_18, %c0_19, %c128_20] : memref<8x16x256xf32, #tpu.memory_space<vmem>>, vector<1x16x128xf32>
    %31 = vector.shape_cast %30 : vector<1x16x128xf32> to vector<16x128xf32>
    %32 = vector.shape_cast %29 : vector<16x128xf32> to vector<1x16x128xf32>
    tpu.vector_store %arg2[%c1_18, %c0_19, %c128_20], %32 {strides = array<i32>} : memref<8x16x256xf32, #tpu.memory_space<vmem>>, vector<1x16x128xf32>,
    %c2_i32 = arith.constant 2 : i32
    %33 = arith.addi %0, %c2_i32 : i32
    %c15_i32_21 = arith.constant 15 : i32
    %34 = arith.minsi %33, %c15_i32_21 : i32
    %c15_i32_22 = arith.constant 15 : i32
    %35 = arith.subi %c15_i32_22, %34 : i32
    %36 = arith.index_cast %35 : i32 to index
    %c0_23 = arith.constant 0 : index
    %c0_24 = arith.constant 0 : index
    %37 = vector.load %arg1[%36, %c0_23, %c0_24] : memref<24x16x128xf32, #tpu.memory_space<vmem>>, vector<1x16x128xf32>
    %38 = vector.shape_cast %37 : vector<1x16x128xf32> to vector<16x128xf32>
    %c2 = arith.constant 2 : index
    %c0_25 = arith.constant 0 : index
    %c0_26 = arith.constant 0 : index
    %39 = vector.load %arg2[%c2, %c0_25, %c0_26] : memref<8x16x256xf32, #tpu.memory_space<vmem>>, vector<1x16x128xf32>
    %40 = vector.shape_cast %39 : vector<1x16x128xf32> to vector<16x128xf32>
    %41 = vector.shape_cast %38 : vector<16x128xf32> to vector<1x16x128xf32>
    tpu.vector_store %arg2[%c2, %c0_25, %c0_26], %41 {strides = array<i32>} : memref<8x16x256xf32, #tpu.memory_space<vmem>>, vector<1x16x128xf32>,
    %c23_i32_27 = arith.constant 23 : i32
    %42 = arith.subi %c23_i32_27, %34 : i32
    %43 = arith.index_cast %42 : i32 to index
    %c0_28 = arith.constant 0 : index
    %c0_29 = arith.constant 0 : index
    %44 = vector.load %arg1[%43, %c0_28, %c0_29] : memref<24x16x128xf32, #tpu.memory_space<vmem>>, vector<1x16x128xf32>
    %45 = vector.shape_cast %44 : vector<1x16x128xf32> to vector<16x128xf32>
    %c2_30 = arith.constant 2 : index
    %c0_31 = arith.constant 0 : index
    %c128_32 = arith.constant 128 : index
    %46 = vector.load %arg2[%c2_30, %c0_31, %c128_32] : memref<8x16x256xf32, #tpu.memory_space<vmem>>, vector<1x16x128xf32>
    %47 = vector.shape_cast %46 : vector<1x16x128xf32> to vector<16x128xf32>
    %48 = vector.shape_cast %45 : vector<16x128xf32> to vector<1x16x128xf32>
    tpu.vector_store %arg2[%c2_30, %c0_31, %c128_32], %48 {strides = array<i32>} : memref<8x16x256xf32, #tpu.memory_space<vmem>>, vector<1x16x128xf32>,
    %c3_i32 = arith.constant 3 : i32
    %49 = arith.addi %0, %c3_i32 : i32
    %c15_i32_33 = arith.constant 15 : i32
    %50 = arith.minsi %49, %c15_i32_33 : i32
    %c15_i32_34 = arith.constant 15 : i32
    %51 = arith.subi %c15_i32_34, %50 : i32
    %52 = arith.index_cast %51 : i32 to index
    %c0_35 = arith.constant 0 : index
    %c0_36 = arith.constant 0 : index
    %53 = vector.load %arg1[%52, %c0_35, %c0_36] : memref<24x16x128xf32, #tpu.memory_space<vmem>>, vector<1x16x128xf32>
    %54 = vector.shape_cast %53 : vector<1x16x128xf32> to vector<16x128xf32>
    %c3 = arith.constant 3 : index
    %c0_37 = arith.constant 0 : index
    %c0_38 = arith.constant 0 : index
    %55 = vector.load %arg2[%c3, %c0_37, %c0_38] : memref<8x16x256xf32, #tpu.memory_space<vmem>>, vector<1x16x128xf32>
    %56 = vector.shape_cast %55 : vector<1x16x128xf32> to vector<16x128xf32>
    %57 = vector.shape_cast %54 : vector<16x128xf32> to vector<1x16x128xf32>
    tpu.vector_store %arg2[%c3, %c0_37, %c0_38], %57 {strides = array<i32>} : memref<8x16x256xf32, #tpu.memory_space<vmem>>, vector<1x16x128xf32>,
    %c23_i32_39 = arith.constant 23 : i32
    %58 = arith.subi %c23_i32_39, %50 : i32
    %59 = arith.index_cast %58 : i32 to index
    %c0_40 = arith.constant 0 : index
    %c0_41 = arith.constant 0 : index
    %60 = vector.load %arg1[%59, %c0_40, %c0_41] : memref<24x16x128xf32, #tpu.memory_space<vmem>>, vector<1x16x128xf32>
    %61 = vector.shape_cast %60 : vector<1x16x128xf32> to vector<16x128xf32>
    %c3_42 = arith.constant 3 : index
    %c0_43 = arith.constant 0 : index
    %c128_44 = arith.constant 128 : index
    %62 = vector.load %arg2[%c3_42, %c0_43, %c128_44] : memref<8x16x256xf32, #tpu.memory_space<vmem>>, vector<1x16x128xf32>
    %63 = vector.shape_cast %62 : vector<1x16x128xf32> to vector<16x128xf32>
    %64 = vector.shape_cast %61 : vector<16x128xf32> to vector<1x16x128xf32>
    tpu.vector_store %arg2[%c3_42, %c0_43, %c128_44], %64 {strides = array<i32>} : memref<8x16x256xf32, #tpu.memory_space<vmem>>, vector<1x16x128xf32>,
    %c4_i32 = arith.constant 4 : i32
    %65 = arith.addi %0, %c4_i32 : i32
    %c15_i32_45 = arith.constant 15 : i32
    %66 = arith.minsi %65, %c15_i32_45 : i32
    %c15_i32_46 = arith.constant 15 : i32
    %67 = arith.subi %c15_i32_46, %66 : i32
    %68 = arith.index_cast %67 : i32 to index
    %c0_47 = arith.constant 0 : index
    %c0_48 = arith.constant 0 : index
    %69 = vector.load %arg1[%68, %c0_47, %c0_48] : memref<24x16x128xf32, #tpu.memory_space<vmem>>, vector<1x16x128xf32>
    %70 = vector.shape_cast %69 : vector<1x16x128xf32> to vector<16x128xf32>
    %c4 = arith.constant 4 : index
    %c0_49 = arith.constant 0 : index
    %c0_50 = arith.constant 0 : index
    %71 = vector.load %arg2[%c4, %c0_49, %c0_50] : memref<8x16x256xf32, #tpu.memory_space<vmem>>, vector<1x16x128xf32>
    %72 = vector.shape_cast %71 : vector<1x16x128xf32> to vector<16x128xf32>
    %73 = vector.shape_cast %70 : vector<16x128xf32> to vector<1x16x128xf32>
    tpu.vector_store %arg2[%c4, %c0_49, %c0_50], %73 {strides = array<i32>} : memref<8x16x256xf32, #tpu.memory_space<vmem>>, vector<1x16x128xf32>,
    %c23_i32_51 = arith.constant 23 : i32
    %74 = arith.subi %c23_i32_51, %66 : i32
    %75 = arith.index_cast %74 : i32 to index
    %c0_52 = arith.constant 0 : index
    %c0_53 = arith.constant 0 : index
    %76 = vector.load %arg1[%75, %c0_52, %c0_53] : memref<24x16x128xf32, #tpu.memory_space<vmem>>, vector<1x16x128xf32>
    %77 = vector.shape_cast %76 : vector<1x16x128xf32> to vector<16x128xf32>
    %c4_54 = arith.constant 4 : index
    %c0_55 = arith.constant 0 : index
    %c128_56 = arith.constant 128 : index
    %78 = vector.load %arg2[%c4_54, %c0_55, %c128_56] : memref<8x16x256xf32, #tpu.memory_space<vmem>>, vector<1x16x128xf32>
    %79 = vector.shape_cast %78 : vector<1x16x128xf32> to vector<16x128xf32>
    %80 = vector.shape_cast %77 : vector<16x128xf32> to vector<1x16x128xf32>
    tpu.vector_store %arg2[%c4_54, %c0_55, %c128_56], %80 {strides = array<i32>} : memref<8x16x256xf32, #tpu.memory_space<vmem>>, vector<1x16x128xf32>,
    %c5_i32 = arith.constant 5 : i32
    %81 = arith.addi %0, %c5_i32 : i32
    %c15_i32_57 = arith.constant 15 : i32
    %82 = arith.minsi %81, %c15_i32_57 : i32
    %c15_i32_58 = arith.constant 15 : i32
    %83 = arith.subi %c15_i32_58, %82 : i32
    %84 = arith.index_cast %83 : i32 to index
    %c0_59 = arith.constant 0 : index
    %c0_60 = arith.constant 0 : index
    %85 = vector.load %arg1[%84, %c0_59, %c0_60] : memref<24x16x128xf32, #tpu.memory_space<vmem>>, vector<1x16x128xf32>
    %86 = vector.shape_cast %85 : vector<1x16x128xf32> to vector<16x128xf32>
    %c5 = arith.constant 5 : index
    %c0_61 = arith.constant 0 : index
    %c0_62 = arith.constant 0 : index
    %87 = vector.load %arg2[%c5, %c0_61, %c0_62] : memref<8x16x256xf32, #tpu.memory_space<vmem>>, vector<1x16x128xf32>
    %88 = vector.shape_cast %87 : vector<1x16x128xf32> to vector<16x128xf32>
    %89 = vector.shape_cast %86 : vector<16x128xf32> to vector<1x16x128xf32>
    tpu.vector_store %arg2[%c5, %c0_61, %c0_62], %89 {strides = array<i32>} : memref<8x16x256xf32, #tpu.memory_space<vmem>>, vector<1x16x128xf32>,
    %c23_i32_63 = arith.constant 23 : i32
    %90 = arith.subi %c23_i32_63, %82 : i32
    %91 = arith.index_cast %90 : i32 to index
    %c0_64 = arith.constant 0 : index
    %c0_65 = arith.constant 0 : index
    %92 = vector.load %arg1[%91, %c0_64, %c0_65] : memref<24x16x128xf32, #tpu.memory_space<vmem>>, vector<1x16x128xf32>
    %93 = vector.shape_cast %92 : vector<1x16x128xf32> to vector<16x128xf32>
    %c5_66 = arith.constant 5 : index
    %c0_67 = arith.constant 0 : index
    %c128_68 = arith.constant 128 : index
    %94 = vector.load %arg2[%c5_66, %c0_67, %c128_68] : memref<8x16x256xf32, #tpu.memory_space<vmem>>, vector<1x16x128xf32>
    %95 = vector.shape_cast %94 : vector<1x16x128xf32> to vector<16x128xf32>
    %96 = vector.shape_cast %93 : vector<16x128xf32> to vector<1x16x128xf32>
    tpu.vector_store %arg2[%c5_66, %c0_67, %c128_68], %96 {strides = array<i32>} : memref<8x16x256xf32, #tpu.memory_space<vmem>>, vector<1x16x128xf32>,
    %c6_i32 = arith.constant 6 : i32
    %97 = arith.addi %0, %c6_i32 : i32
    %c15_i32_69 = arith.constant 15 : i32
    %98 = arith.minsi %97, %c15_i32_69 : i32
    %c15_i32_70 = arith.constant 15 : i32
    %99 = arith.subi %c15_i32_70, %98 : i32
    %100 = arith.index_cast %99 : i32 to index
    %c0_71 = arith.constant 0 : index
    %c0_72 = arith.constant 0 : index
    %101 = vector.load %arg1[%100, %c0_71, %c0_72] : memref<24x16x128xf32, #tpu.memory_space<vmem>>, vector<1x16x128xf32>
    %102 = vector.shape_cast %101 : vector<1x16x128xf32> to vector<16x128xf32>
    %c6 = arith.constant 6 : index
    %c0_73 = arith.constant 0 : index
    %c0_74 = arith.constant 0 : index
    %103 = vector.load %arg2[%c6, %c0_73, %c0_74] : memref<8x16x256xf32, #tpu.memory_space<vmem>>, vector<1x16x128xf32>
    %104 = vector.shape_cast %103 : vector<1x16x128xf32> to vector<16x128xf32>
    %105 = vector.shape_cast %102 : vector<16x128xf32> to vector<1x16x128xf32>
    tpu.vector_store %arg2[%c6, %c0_73, %c0_74], %105 {strides = array<i32>} : memref<8x16x256xf32, #tpu.memory_space<vmem>>, vector<1x16x128xf32>,
    %c23_i32_75 = arith.constant 23 : i32
    %106 = arith.subi %c23_i32_75, %98 : i32
    %107 = arith.index_cast %106 : i32 to index
    %c0_76 = arith.constant 0 : index
    %c0_77 = arith.constant 0 : index
    %108 = vector.load %arg1[%107, %c0_76, %c0_77] : memref<24x16x128xf32, #tpu.memory_space<vmem>>, vector<1x16x128xf32>
    %109 = vector.shape_cast %108 : vector<1x16x128xf32> to vector<16x128xf32>
    %c6_78 = arith.constant 6 : index
    %c0_79 = arith.constant 0 : index
    %c128_80 = arith.constant 128 : index
    %110 = vector.load %arg2[%c6_78, %c0_79, %c128_80] : memref<8x16x256xf32, #tpu.memory_space<vmem>>, vector<1x16x128xf32>
    %111 = vector.shape_cast %110 : vector<1x16x128xf32> to vector<16x128xf32>
    %112 = vector.shape_cast %109 : vector<16x128xf32> to vector<1x16x128xf32>
    tpu.vector_store %arg2[%c6_78, %c0_79, %c128_80], %112 {strides = array<i32>} : memref<8x16x256xf32, #tpu.memory_space<vmem>>, vector<1x16x128xf32>,
    %c7_i32 = arith.constant 7 : i32
    %113 = arith.addi %0, %c7_i32 : i32
    %c15_i32_81 = arith.constant 15 : i32
    %114 = arith.minsi %113, %c15_i32_81 : i32
    %c15_i32_82 = arith.constant 15 : i32
    %115 = arith.subi %c15_i32_82, %114 : i32
    %116 = arith.index_cast %115 : i32 to index
    %c0_83 = arith.constant 0 : index
    %c0_84 = arith.constant 0 : index
    %117 = vector.load %arg1[%116, %c0_83, %c0_84] : memref<24x16x128xf32, #tpu.memory_space<vmem>>, vector<1x16x128xf32>
    %118 = vector.shape_cast %117 : vector<1x16x128xf32> to vector<16x128xf32>
    %c7 = arith.constant 7 : index
    %c0_85 = arith.constant 0 : index
    %c0_86 = arith.constant 0 : index
    %119 = vector.load %arg2[%c7, %c0_85, %c0_86] : memref<8x16x256xf32, #tpu.memory_space<vmem>>, vector<1x16x128xf32>
    %120 = vector.shape_cast %119 : vector<1x16x128xf32> to vector<16x128xf32>
    %121 = vector.shape_cast %118 : vector<16x128xf32> to vector<1x16x128xf32>
    tpu.vector_store %arg2[%c7, %c0_85, %c0_86], %121 {strides = array<i32>} : memref<8x16x256xf32, #tpu.memory_space<vmem>>, vector<1x16x128xf32>,
    %c23_i32_87 = arith.constant 23 : i32
    %122 = arith.subi %c23_i32_87, %114 : i32
    %123 = arith.index_cast %122 : i32 to index
    %c0_88 = arith.constant 0 : index
    %c0_89 = arith.constant 0 : index
    %124 = vector.load %arg1[%123, %c0_88, %c0_89] : memref<24x16x128xf32, #tpu.memory_space<vmem>>, vector<1x16x128xf32>
    %125 = vector.shape_cast %124 : vector<1x16x128xf32> to vector<16x128xf32>
    %c7_90 = arith.constant 7 : index
    %c0_91 = arith.constant 0 : index
    %c128_92 = arith.constant 128 : index
    %126 = vector.load %arg2[%c7_90, %c0_91, %c128_92] : memref<8x16x256xf32, #tpu.memory_space<vmem>>, vector<1x16x128xf32>
    %127 = vector.shape_cast %126 : vector<1x16x128xf32> to vector<16x128xf32>
    %128 = vector.shape_cast %125 : vector<16x128xf32> to vector<1x16x128xf32>
    tpu.vector_store %arg2[%c7_90, %c0_91, %c128_92], %128 {strides = array<i32>} : memref<8x16x256xf32, #tpu.memory_space<vmem>>, vector<1x16x128xf32>,
    return
  }
  func.func @transform_0(%arg0: i32) -> (i32, i32, i32) {
    %c0_i32 = arith.constant 0 : i32
    %c0_i32_0 = arith.constant 0 : i32
    %c0_i32_1 = arith.constant 0 : i32
    %c0_i32_2 = arith.constant 0 : i32
    return %c0_i32, %c0_i32_0, %c0_i32_1 : i32, i32, i32
  }
  func.func @transform_1(%arg0: i32) -> (i32, i32, i32) {
    %c0_i32 = arith.constant 0 : i32
    %c0_i32_0 = arith.constant 0 : i32
    %c0_i32_1 = arith.constant 0 : i32
    return %arg0, %c0_i32, %c0_i32_0 : i32, i32, i32
  }
}

</mosaic_0001>

<bundles_post_ra>
// kernel: tpu_custom_call.1
= control target key start
LH: loop header
LB: loop body
LE: loop exit
PB: predicated region body
PF: predicated region fallthrough
CT: control target
= control target key end

     0   :  { %6 = vsyncpa [#allocation3], 0  ;;  %s772_s0 = inlined_call_operand.hbm [shape: f32[24,16,128], index: 0, kind: input, shape index: {}]   ;;  %s773_s1 = inlined_call_operand.hbm [shape: f32[16,16,256], index: 1, kind: output, shape index: {}]  }
   0x1   :  { %7 = vsyncpa [#allocation4], 0 }
   0x2   :  { %9 = vsyncpa [#allocation4 + $0x1], 0  ;;  %s584_s6 = smov 0   ;;  %s586_s7 = smov 0  }
   0x3   :  { %s588_s8 = smov 0   ;;  %s590_s9 = smov 0  }
   0x4 LB: > { %s605_s10 = sadd.s32 4294967295, %s566_s9   ;;  %s363_s11 = sadd.s32 4294967294, %s566_s9   ;;  %s566_s9 = sphi %s590_s9, %s781_s9   ;;  %s562_s8 = sphi %s588_s8, %s780_s8   ;;  %s558_s7 = sphi %s586_s7, %s779_s7   ;;  %s554_s6 = sphi %s584_s6, %s778_s6  }
   0x5   : > { %s609_s12 = sadd.s32 1, %s566_s9   ;;  %s43_s13 = sadd.s32 1, %s562_s8 }
   0x6   : > { %s40_s14 = ssub.s32 %s566_s9, %s609_s12  ;;  %p53_p0 = scmp.ne.s32.totalorder %s562_s8, %s558_s7 }
   0x7   : > { %p41_p1 = scmp.eq.s32.totalorder %s40_s14, 0  ;;  %p54_p2 = scmp.eq.s32.totalorder %s605_s10, 1 }
   0x8   : > { %p59_p3 = scmp.ne.s32.totalorder %s558_s7, %s554_s6  ;;  %p60_p4 = scmp.eq.s32.totalorder %s363_s11, 1 }
   0x9   : > { %s620_s15 = scalar_select %p41_p1, %s562_s8, %s43_s13  }
   0xa   : > { %p622_p5 = por %p54_p2, %p53_p0  ;;  %p626_p6 = por %p60_p4, %p59_p3 }
   0xb   : > { %p364_p7 = scmp.ge.s32.totalorder %s566_s9, 1  ;;  %p67_p8 = scmp.lt.s32.totalorder %s566_s9, 3 }
   0xc   : > { %s775_s17 = scalar_select %p626_p6, 1, 0 }
   0xd   : > { %p436_p9 = scmp.eq.s32.totalorder %s605_s10, 0  ;;  %p633_p10 = pnand %p364_p7, %p67_p8 }
   0xe   : > { %s568_s19 = smov [#allocation2]  }
   0xf   : > { %s79_s20 = sshll.u32 %s568_s19, 4  ;;  %p428_p11 = pneg %p633_p10  ;;  %s80_s20 = int_to_ptr.vmem [resolvable:$true] %s79_s20 }
  0x10   : > { %s487_s21 = scalar_lea.vmem %s80_s20, 6144  ;;  %p495_p3 = scmp.lt.s32.totalorder %s80_s20, %s80_s20 }
  0x11   : > { %p429_p12 = pnand %p436_p9, %p428_p11  ;;  %p488_p0 = scmp.ne.s32.totalorder %s80_s20, %s487_s21 }
  0x12   : > { %p496_p4 = scmp.lt.s32.totalorder %s487_s21, %s487_s21 }
  0x13   : > { %p478_p13 = pneg %p429_p12 }
  0x14   : > { %p497_p6 = por %p496_p4, %p495_p3 }
  0x15   : > { %p490_p1 = pnand %p488_p0, %p478_p13 }
  0x17   : > { %p491_p2 = pneg %p490_p1 }
  0x19   : > { %p498_p7 = pnand %p497_p6, %p491_p2 }
  0x1b   : > { %501 = shalt.err (!%p498_p7)
}
  0x1c   : > { %s569_s22 = smov 128   ;;  %s570_s23 = smov 8  }
  0x1d   : > { %431 = dma.hbm_to_vmem [thread:$0]  (!%p429_p12), %s772_s0, 6144, %s80_s20, [#allocation3], %s569_s22, %s569_s22, %s570_s23  }
  0x1e   : > { %95 = sbr.rel (%p633_p10) target bundleno = 98 (0x62), region = 24 }
  0x23   : > { %545 = dma.done.wait (%p436_p9), [#allocation3], 6144  }
  0x24   : > { %547 = vsyncadd (%p436_p9), [#allocation3], 4294961152  ;;  %s107_s26 = sand.u32 1, %s558_s7   ;;  %s652_s27 = sshll.u32 %s605_s10, 3 }
  0x25   : > { %s368_s28 = sshll.u32 %s107_s26, 8  ;;  %p112_p6 = scmp.lt.s32.totalorder %s652_s27, 15 }
  0x26   : > { %s128_s30 = sadd.s32 1, %s652_s27  ;;  %s146_s2 = sadd.s32 2, %s652_s27 }
  0x27   : > { %s113_s29 = scalar_select %p112_p6, %s652_s27, 15 }
  0x28   : > { %p129_p8 = scmp.lt.s32.totalorder %s128_s30, 15  ;;  %p147_p9 = scmp.lt.s32.totalorder %s146_s2, 15 }
  0x29   : > { %s114_s3 = ssub.s32 15, %s113_s29  ;;  %s121_s4 = ssub.s32 23, %s113_s29 }
  0x2a   : > { %s370_s5 = sshll.u32 %s114_s3, 4  ;;  %s371_s11 = sshll.u32 %s121_s4, 4 }
  0x2b   : > { %s116_s13 = scalar_lea.vmem [#allocation2], %s370_s5  ;;  %s123_s14 = scalar_lea.vmem [#allocation2], %s371_s11 }
  0x2c   : > { %v117_v0 = vld [vmem:[%s116_s13] sm:$0xff]  ;;  %v118_v1 = vld [vmem:[%s116_s13 + $0x8] sm:$0xff]  ;;  %s660_s18 = scalar_lea.vmem [#allocation5], %s368_s28  ;;  %s164_s19 = sadd.s32 3, %s652_s27 }
  0x2d   : > { %v124_v2 = vld [vmem:[%s123_s14] sm:$0xff]  ;;  %119 = vst [vmem:[%s660_s18] sm:$0xff] %v117_v0  ;;  %120 = vst [vmem:[%s660_s18 + $0x10] sm:$0xff] %v118_v1  ;;  %v125_v3 = vld [vmem:[%s123_s14 + $0x8] sm:$0xff]  ;;  %s182_s20 = sadd.s32 4, %s652_s27  ;;  %s783_s30 = smov (!%p129_p8, %s128_s30), 15 }
  0x2e   : > { %126 = vst [vmem:[%s660_s18 + $0x8] sm:$0xff] %v124_v2  ;;  %127 = vst [vmem:[%s660_s18 + $0x18] sm:$0xff] %v125_v3  ;;  %s785_s2 = smov (!%p147_p9, %s146_s2), 15  ;;  %s131_s21 = ssub.s32 15, %s783_s30 }
  0x2f   : > { %s139_s22 = ssub.s32 23, %s783_s30  ;;  %s372_s23 = sshll.u32 %s131_s21, 4 }
  0x30   : > { %s375_s24 = sshll.u32 %s139_s22, 4  ;;  %s133_s25 = scalar_lea.vmem [#allocation2], %s372_s23 }
  0x31   : > { %v134_v4 = vld [vmem:[%s133_s25] sm:$0xff]  ;;  %v135_v5 = vld [vmem:[%s133_s25 + $0x8] sm:$0xff]  ;;  %s141_s28 = scalar_lea.vmem [#allocation2], %s375_s24  ;;  %s149_s29 = ssub.s32 15, %s785_s2 }
  0x32   : > { %v142_v6 = vld [vmem:[%s141_s28] sm:$0xff]  ;;  %s157_s3 = ssub.s32 23, %s785_s2  ;;  %373 = vst [vmem:[%s660_s18 + $0x20] sm:$0xff] %v134_v4  ;;  %374 = vst [vmem:[%s660_s18 + $0x30] sm:$0xff] %v135_v5  ;;  %v143_v7 = vld [vmem:[%s141_s28 + $0x8] sm:$0xff]  ;;  %s378_s30 = sshll.u32 %s149_s29, 4 }
  0x33   : > { %376 = vst [vmem:[%s660_s18 + $0x28] sm:$0xff] %v142_v6  ;;  %s381_s4 = sshll.u32 %s157_s3, 4  ;;  %377 = vst [vmem:[%s660_s18 + $0x38] sm:$0xff] %v143_v7  ;;  %s151_s5 = scalar_lea.vmem [#allocation2], %s378_s30 }
  0x34   : > { %v152_v8 = vld [vmem:[%s151_s5] sm:$0xff]  ;;  %v153_v9 = vld [vmem:[%s151_s5 + $0x8] sm:$0xff]  ;;  %s159_s11 = scalar_lea.vmem [#allocation2], %s381_s4  ;;  %p165_p10 = scmp.lt.s32.totalorder %s164_s19, 15 }
  0x35   : > { %v160_v10 = vld [vmem:[%s159_s11] sm:$0xff]  ;;  %p183_p11 = scmp.lt.s32.totalorder %s182_s20, 15  ;;  %379 = vst [vmem:[%s660_s18 + $0x40] sm:$0xff] %v152_v8  ;;  %380 = vst [vmem:[%s660_s18 + $0x50] sm:$0xff] %v153_v9  ;;  %v161_v11 = vld [vmem:[%s159_s11 + $0x8] sm:$0xff]  ;;  %s200_s2 = sadd.s32 5, %s652_s27 }
  0x36   : > { %382 = vst [vmem:[%s660_s18 + $0x48] sm:$0xff] %v160_v10  ;;  %s218_s13 = sadd.s32 6, %s652_s27  ;;  %383 = vst [vmem:[%s660_s18 + $0x58] sm:$0xff] %v161_v11  ;;  %s787_s19 = smov (!%p165_p10, %s164_s19), 15 }
  0x37   : > { %s789_s20 = smov (!%p183_p11, %s182_s20), 15  ;;  %s167_s14 = ssub.s32 15, %s787_s19 }
  0x38   : > { %s175_s21 = ssub.s32 23, %s787_s19  ;;  %s384_s22 = sshll.u32 %s167_s14, 4 }
  0x39   : > { %s387_s23 = sshll.u32 %s175_s21, 4  ;;  %s169_s24 = scalar_lea.vmem [#allocation2], %s384_s22 }
  0x3a   : > { %v170_v12 = vld [vmem:[%s169_s24] sm:$0xff]  ;;  %v171_v13 = vld [vmem:[%s169_s24 + $0x8] sm:$0xff]  ;;  %s177_s25 = scalar_lea.vmem [#allocation2], %s387_s23  ;;  %s185_s28 = ssub.s32 15, %s789_s20 }
  0x3b   : > { %v178_v14 = vld [vmem:[%s177_s25] sm:$0xff]  ;;  %s193_s29 = ssub.s32 23, %s789_s20  ;;  %385 = vst [vmem:[%s660_s18 + $0x60] sm:$0xff] %v170_v12  ;;  %386 = vst [vmem:[%s660_s18 + $0x70] sm:$0xff] %v171_v13  ;;  %v179_v15 = vld [vmem:[%s177_s25 + $0x8] sm:$0xff]  ;;  %s390_s19 = sshll.u32 %s185_s28, 4 }
  0x3c   : > { %388 = vst [vmem:[%s660_s18 + $0x68] sm:$0xff] %v178_v14  ;;  %s393_s3 = sshll.u32 %s193_s29, 4  ;;  %389 = vst [vmem:[%s660_s18 + $0x78] sm:$0xff] %v179_v15  ;;  %s187_s30 = scalar_lea.vmem [#allocation2], %s390_s19 }
  0x3d   : > { %v188_v16 = vld [vmem:[%s187_s30] sm:$0xff]  ;;  %v189_v17 = vld [vmem:[%s187_s30 + $0x8] sm:$0xff]  ;;  %s195_s4 = scalar_lea.vmem [#allocation2], %s393_s3  ;;  %p201_p12 = scmp.lt.s32.totalorder %s200_s2, 15 }
  0x3e   : > { %v196_v18 = vld [vmem:[%s195_s4] sm:$0xff]  ;;  %p219_p13 = scmp.lt.s32.totalorder %s218_s13, 15  ;;  %391 = vst [vmem:[%s660_s18 + $0x80] sm:$0xff] %v188_v16  ;;  %392 = vst [vmem:[%s660_s18 + $0x90] sm:$0xff] %v189_v17  ;;  %v197_v19 = vld [vmem:[%s195_s4 + $0x8] sm:$0xff]  ;;  %s236_s20 = sadd.s32 7, %s652_s27 }
  0x3f   : > { %394 = vst [vmem:[%s660_s18 + $0x88] sm:$0xff] %v196_v18  ;;  %s421_s5 = sshll.u32 %s605_s10, 12  ;;  %395 = vst [vmem:[%s660_s18 + $0x98] sm:$0xff] %v197_v19  ;;  %s791_s2 = smov (!%p201_p12, %s200_s2), 15 }
  0x40   : > { %s793_s13 = smov (!%p219_p13, %s218_s13), 15  ;;  %s203_s11 = ssub.s32 15, %s791_s2 }
  0x41   : > { %s211_s14 = ssub.s32 23, %s791_s2  ;;  %s396_s21 = sshll.u32 %s203_s11, 4 }
  0x42   : > { %s399_s22 = sshll.u32 %s211_s14, 4  ;;  %s205_s23 = scalar_lea.vmem [#allocation2], %s396_s21 }
  0x43   : > { %v206_v20 = vld [vmem:[%s205_s23] sm:$0xff]  ;;  %v207_v21 = vld [vmem:[%s205_s23 + $0x8] sm:$0xff]  ;;  %s213_s24 = scalar_lea.vmem [#allocation2], %s399_s22  ;;  %s221_s25 = ssub.s32 15, %s793_s13 }
  0x44   : > { %v214_v22 = vld [vmem:[%s213_s24] sm:$0xff]  ;;  %s229_s28 = ssub.s32 23, %s793_s13  ;;  %397 = vst [vmem:[%s660_s18 + $0xa0] sm:$0xff] %v206_v20  ;;  %398 = vst [vmem:[%s660_s18 + $0xb0] sm:$0xff] %v207_v21  ;;  %v215_v23 = vld [vmem:[%s213_s24 + $0x8] sm:$0xff]  ;;  %s402_s2 = sshll.u32 %s221_s25, 4 }
  0x45   : > { %400 = vst [vmem:[%s660_s18 + $0xa8] sm:$0xff] %v214_v22  ;;  %s405_s29 = sshll.u32 %s229_s28, 4  ;;  %401 = vst [vmem:[%s660_s18 + $0xb8] sm:$0xff] %v215_v23  ;;  %s223_s19 = scalar_lea.vmem [#allocation2], %s402_s2 }
  0x46   : > { %v224_v24 = vld [vmem:[%s223_s19] sm:$0xff]  ;;  %v225_v25 = vld [vmem:[%s223_s19 + $0x8] sm:$0xff]  ;;  %s231_s3 = scalar_lea.vmem [#allocation2], %s405_s29  ;;  %p237_p0 = scmp.lt.s32.totalorder %s236_s20, 15 }
  0x47   : > { %v232_v26 = vld [vmem:[%s231_s3] sm:$0xff]  ;;  %403 = vst [vmem:[%s660_s18 + $0xc0] sm:$0xff] %v224_v24  ;;  %404 = vst [vmem:[%s660_s18 + $0xd0] sm:$0xff] %v225_v25  ;;  %v233_v27 = vld [vmem:[%s231_s3 + $0x8] sm:$0xff]  ;;  %s718_s4 = scalar_lea.hbm %s773_s1, %s421_s5  ;;  %s269_s11 = sshll.u32 %s660_s18, 4  ;;  %s724_s11 = int_to_ptr.vmem [resolvable:$true] %s269_s11 }
  0x48   : > { %406 = vst [vmem:[%s660_s18 + $0xc8] sm:$0xff] %v232_v26  ;;  %407 = vst [vmem:[%s660_s18 + $0xd8] sm:$0xff] %v233_v27  ;;  %s795_s20 = smov (!%p237_p0, %s236_s20), 15  ;;  %s732_s27 = scalar_lea.sflag [#allocation4], %s107_s26 }
  0x49   : > { %s239_s14 = ssub.s32 15, %s795_s20  ;;  %s247_s21 = ssub.s32 23, %s795_s20 }
  0x4a   : > { %s408_s22 = sshll.u32 %s239_s14, 4  ;;  %s411_s23 = sshll.u32 %s247_s21, 4 }
  0x4b   : > { %s241_s24 = scalar_lea.vmem [#allocation2], %s408_s22  ;;  %s249_s10 = scalar_lea.vmem [#allocation2], %s411_s23 }
  0x4c   : > { %v242_v28 = vld [vmem:[%s241_s24] sm:$0xff]  ;;  %v243_v29 = vld [vmem:[%s241_s24 + $0x8] sm:$0xff]  ;;  %s502_s20 = scalar_lea.vmem %s724_s11, 4096  ;;  %s571_s5 = smov [#allocation5]  }
  0x4d   : > { %v250_v30 = vld [vmem:[%s249_s10] sm:$0xff]  ;;  %409 = vst [vmem:[%s660_s18 + $0xe0] sm:$0xff] %v242_v28  ;;  %410 = vst [vmem:[%s660_s18 + $0xf0] sm:$0xff] %v243_v29  ;;  %v251_v31 = vld [vmem:[%s249_s10 + $0x8] sm:$0xff]  ;;  %p503_p1 = scmp.ne.s32.totalorder %s724_s11, %s502_s20  ;;  %s506_s25 = sshll.u32 %s571_s5, 4  ;;  %s507_s25 = int_to_ptr.vmem [resolvable:$false] %s506_s25 }
  0x4e   : > { %412 = vst [vmem:[%s660_s18 + $0xe8] sm:$0xff] %v250_v30  ;;  %413 = vst [vmem:[%s660_s18 + $0xf8] sm:$0xff] %v251_v31  ;;  %s508_s28 = scalar_lea.vmem %s507_s25, 8192  ;;  %p509_p4 = scmp.lt.s32.totalorder %s724_s11, %s507_s25 }
  0x4f   : > { %p504_p2 = pnand %p503_p1, %p622_p5  ;;  %p510_p7 = scmp.lt.s32.totalorder %s508_s28, %s502_s20 }
  0x51   : > { %p505_p3 = pneg %p504_p2  ;;  %p511_p6 = por %p510_p7, %p509_p4 }
  0x53   : > { %p512_p8 = pnand %p511_p6, %p505_p3 }
  0x55   : > { %515 = shalt.err (!%p512_p8)
}
  0x56   : > { %s516_s26 = scalar_lea.hbm %s718_s4, 4096  ;;  %s520_s29 = scalar_lea.hbm %s773_s1, 8192 }
  0x57   : > { %p517_p9 = scmp.ne.s32.totalorder %s718_s4, %s516_s26  ;;  %p521_p12 = scmp.lt.s32.totalorder %s718_s4, %s773_s1 }
  0x58   : > { %p522_p13 = scmp.lt.s32.totalorder %s520_s29, %s516_s26 }
  0x59   : > { %p518_p10 = pnand %p517_p9, %p622_p5 }
  0x5a   : > { %p523_p0 = por %p522_p13, %p521_p12 }
  0x5b   : > { %p519_p11 = pneg %p518_p10 }
  0x5d   : > { %p524_p1 = pnand %p523_p0, %p519_p11 }
  0x5f   : > { %527 = shalt.err (!%p524_p1)
}
  0x60   : > { %s572_s13 = smov 256   ;;  %s573_s30 = smov 16  }
  0x61   : > { %426 = dma.vmem_to_hbm [thread:$0]  (%p622_p5), %s724_s11, 4096, %s718_s4, %s732_s27, %s572_s13, %s572_s13, %s573_s30  }
  0x62 PF: > { %p438_p2 = scmp.ge.s32.totalorder %s566_s9, 2  ;;  %s284_s14 = sand.u32 1, %s554_s6  }
  0x63   : > { %p777_p3 = scmp.ne.s32.totalorder %s775_s17, 0  ;;  %s285_s21 = scalar_lea.sflag [#allocation4], %s284_s14 }
  0x65   : > { %p433_p4 = pnand %p438_p2, %p777_p3 }
  0x67   : > { %p434_p7 = pneg %p433_p4 }
  0x69   : > { %549 = dma.done.wait (%p434_p7), %s285_s21, 4096  }
  0x6a   : > { %551 = vsyncadd (%p434_p7), %s285_s21, 4294963200  ;;  %p12_p6 = scmp.ge.s32.totalorder %s609_s12, 4   ;;  %s778_s6 = smov %s558_s7 }
  0x6b   : > { %s779_s7 = smov %s562_s8  ;;  %s780_s8 = smov %s620_s15 }
  0x6c   : > { %s781_s9 = smov %s609_s12  ;;  %14 = sbr.rel (!%p12_p6) target bundleno = 4 (0x4), region = 84 }
  0x71   :  { %290 = vsyncpa [#allocation3], 1 }
  0x72   :  { %292 = vsyncpa [#allocation3 + $0x1], 1 }
  0x73   :  { %293 = vsyncpa [#allocation4], 1 }
  0x74   :  { %295 = vsyncpa [#allocation4 + $0x1], 1 }

</bundles_post_ra>
